<compile_context>
chip_gen: v7x
topology: tpu7x:2x2x1
jax: 0.10.0
libtpu: 0.0.40
codegen_flags: <defaults>
</compile_context>

<pallas_src>
import jax
import jax.numpy as jnp
from jax.experimental import pallas as pl
from jax.experimental.pallas import tpu as pltpu


def _jsrelu_kernel(x_ref, o_ref):
    x = x_ref[...]
    r = jnp.maximum(x, 0)                       # vmax replaces vcmp + vselect
    o_ref[...] = (r * (0.5 * r + 1.0)).astype(o_ref.dtype)


# Minimum second-to-last (sublane) tile per element size: f32 -> 8,
# bf16/f16 -> 16, int8/fp8 -> 32 (sub-32-bit dtypes pack along sublanes).
_SUBLANE_MULT = {8: 8, 4: 8, 2: 16, 1: 32}

_LANE_CANDIDATES = (8192, 4096, 2048, 1024, 512, 256, 128)


def _device_params():
    """Returns (target_block_bytes, vmem_limit_bytes, has_two_tensorcores)."""
    kind = ""
    try:
        kind = jax.devices()[0].device_kind.lower()
    except Exception:
        pass
    if "v7" in kind:
        # v7x: 64 MiB VMEM per TC, ~3.2 TB/s HBM, 2 TensorCores per chip.
        # 4 double-buffered copies of a ~10 MiB block -> ~40 MiB scoped VMEM.
        return 10 * 1024 * 1024, 48 * 1024 * 1024, True
    # v4 / v5p expose two cores (megacore); v5e ("v5 lite") / v6e are single-TC.
    two_tc = ("v4" in kind) or ("v5p" in kind) or (
        "v5" in kind and "lite" not in kind and "5e" not in kind)
    # v5e / v6e: 128 MiB physical VMEM (default scoped limit is only 16/32 MiB).
    return 12 * 1024 * 1024, 64 * 1024 * 1024, two_tc


def _pick_lane_width(total: int, sublane_mult: int) -> int:
    """Largest lane width that also keeps rows a multiple of the sublane tile."""
    for cand in _LANE_CANDIDATES:
        if total % cand == 0 and (total // cand) % sublane_mult == 0:
            return cand
    for cand in _LANE_CANDIDATES:
        if total % cand == 0:
            return cand
    return 128


def jumping_squared_relu(x: jax.Array, *, donate: bool = False) -> jax.Array:
    """JumpingSquaredReLU forward pass, elementwise, any shape/dtype."""
    orig_shape = x.shape
    dtype = x.dtype
    n = x.size
    if n == 0:
        return x

    itemsize = jnp.dtype(dtype).itemsize
    sub = _SUBLANE_MULT.get(itemsize, 8)
    target_block_bytes, vmem_limit, two_tc = _device_params()
    io_alias = {0: 0} if donate else {}
    # TODO(synk): verify with xprof that ("parallel",) actually shards the grid
    # across both v7x TensorCores; if one TC idles, switch to
    # pltpu.CORE_PARALLEL / explicit core_map and split rows manually.
    cparams = pltpu.CompilerParams(
        dimension_semantics=("parallel",),
        vmem_limit_bytes=vmem_limit,
    )

    flat = x.reshape(-1)  # contiguous, free

    if n % 128 == 0:
        # ---- Fast path: lane-dense 2-D slab, large unmasked blocks. ----
        C = _pick_lane_width(n, sub)
        rows = n // C
        x2d = flat.reshape(rows, C)

        max_block_rows = max(sub, (target_block_bytes // (C * itemsize) // sub) * sub)
        if rows <= max_block_rows:
            if two_tc and rows >= 2 * sub:
                # Split into 2 grid steps only on 2-TC chips so both cores work.
                block_rows = ((pl.cdiv(rows, 2) + sub - 1) // sub) * sub
            else:
                block_rows = rows          # single full-array block
        else:
            block_rows = max_block_rows
        grid = (pl.cdiv(rows, block_rows),)

        out2d = pl.pallas_call(
            _jsrelu_kernel,
            out_shape=jax.ShapeDtypeStruct((rows, C), dtype),
            grid=grid,
            in_specs=[pl.BlockSpec((block_rows, C), lambda i: (i, 0))],
            out_specs=pl.BlockSpec((block_rows, C), lambda i: (i, 0)),
            compiler_params=cparams,
            input_output_aliases=io_alias,
        )(x2d)
        return out2d.reshape(orig_shape)

    # ---- Rare path: element count not a multiple of 128. ----
    # No pad / slice: run directly on a (1, n) view.  Small n -> one block equal
    # to the full array dims (always legal).  Large n -> 128-multiple lane
    # blocks; the ragged final block is masked by Pallas.  (1, C) blocks waste
    # 7/8 sublanes in VMEM, so keep them modest.
    x2d = flat.reshape(1, n)
    max_cols = 64 * 1024
    if n <= 2 * max_cols:
        block_cols = n
    else:
        block_cols = max_cols
    grid = (pl.cdiv(n, block_cols),)

    out2d = pl.pallas_call(
        _jsrelu_kernel,
        out_shape=jax.ShapeDtypeStruct((1, n), dtype),
        grid=grid,
        in_specs=[pl.BlockSpec((1, block_cols), lambda i: (0, i))],
        out_specs=pl.BlockSpec((1, block_cols), lambda i: (0, i)),
        compiler_params=cparams,
        input_output_aliases=io_alias,
    )(x2d)
    return out2d.reshape(orig_shape)


def jumping_squared_relu_ref(x: jax.Array) -> jax.Array:
    """Pure-JAX reference matching the PyTorch forward."""
    y = ((x + 1.0) ** 2 - 1.0) / 2.0
    return jnp.where(x >= 0, y, jnp.zeros_like(y)).astype(x.dtype)


if __name__ == "__main__":
    key = jax.random.PRNGKey(0)
    k0, k1, k2, k3 = jax.random.split(key, 4)

    # Primary small NCHW input consistent with typical use of the activation.
    x = jax.random.normal(k0, (2, 4, 16, 16), dtype=jnp.float32)
    out = jax.block_until_ready(jumping_squared_relu(x))
    assert out.shape == x.shape and out.dtype == x.dtype
    assert jnp.allclose(out, jumping_squared_relu_ref(x), atol=1e-6, rtol=1e-6), \
        "mismatch vs reference (aligned)"

    # Larger aligned input (exercises the possibly-ragged row-block path).
    x2 = jax.random.normal(k1, (4, 16, 32, 33), dtype=jnp.float32)
    out2 = jax.block_until_ready(jumping_squared_relu(x2))
    assert jnp.allclose(out2, jumping_squared_relu_ref(x2), atol=1e-6, rtol=1e-6), \
        "mismatch vs reference (ragged row block)"

    # Non-128-aligned element count: no pad / no slice, direct (1, n) block.
    x3 = jax.random.normal(k2, (3, 5, 7, 11), dtype=jnp.float32)
    out3 = jax.block_until_ready(jumping_squared_relu(x3))
    assert jnp.allclose(out3, jumping_squared_relu_ref(x3), atol=1e-6, rtol=1e-6), \
        "mismatch vs reference (unaligned)"

    # bf16 exercises the dtype-aware sublane rounding (16-row minimum tile).
    xb = jax.random.normal(k3, (2, 8, 16, 32), dtype=jnp.bfloat16)
    outb = jax.block_until_ready(jumping_squared_relu(xb))
    assert outb.shape == xb.shape and outb.dtype == jnp.bfloat16
    refb = jumping_squared_relu_ref(xb.astype(jnp.float32))
    assert jnp.allclose(outb.astype(jnp.float32), refb, atol=0.25, rtol=0.05), \
        "mismatch vs reference (bf16)"

    print("KERNEL_OK")
</pallas_src>

<mosaic_0001>
module attributes {stable_mosaic.version = 11 : i64} {
  func.func @_jsrelu_kernel(%arg0: i32, %arg1: memref<8x256xf32, #tpu.memory_space<vmem>>, %arg2: memref<8x256xf32, #tpu.memory_space<vmem>>) attributes {dimension_semantics = [#tpu.dimension_semantics<parallel>], iteration_bounds = array<i64: 1>, scalar_prefetch = 0 : i64, scratch_operands = 0 : i64, tpu.core_type = #tpu.core_type<tc>, window_params = [{transform_indices = @transform_0, window_bounds = array<i64: 8, 256>}, {transform_indices = @transform_1, window_bounds = array<i64: 8, 256>}]} {
    %c0 = arith.constant 0 : index
    %c0_0 = arith.constant 0 : index
    %0 = vector.load %arg1[%c0, %c0_0] : memref<8x256xf32, #tpu.memory_space<vmem>>, vector<8x256xf32>
    %cst = arith.constant 0.000000e+00 : f32
    %1 = vector.broadcast %cst : f32 to vector<8x256xf32>
    %2 = arith.maximumf %0, %1 : vector<8x256xf32>
    %cst_1 = arith.constant 5.000000e-01 : f32
    %3 = vector.broadcast %cst_1 : f32 to vector<8x256xf32>
    %4 = arith.mulf %3, %2 : vector<8x256xf32>
    %cst_2 = arith.constant 1.000000e+00 : f32
    %5 = vector.broadcast %cst_2 : f32 to vector<8x256xf32>
    %6 = arith.addf %4, %5 : vector<8x256xf32>
    %7 = arith.mulf %2, %6 : vector<8x256xf32>
    %c0_3 = arith.constant 0 : index
    %c0_4 = arith.constant 0 : index
    %8 = vector.load %arg2[%c0_3, %c0_4] : memref<8x256xf32, #tpu.memory_space<vmem>>, vector<8x256xf32>
    tpu.vector_store %arg2[%c0_3, %c0_4], %7 {strides = array<i32>} : memref<8x256xf32, #tpu.memory_space<vmem>>, vector<8x256xf32>,
    return
  }
  func.func @transform_0(%arg0: i32) -> (i32, i32) {
    %c0_i32 = arith.constant 0 : i32
    %c0_i32_0 = arith.constant 0 : i32
    return %arg0, %c0_i32 : i32, i32
  }
  func.func @transform_1(%arg0: i32) -> (i32, i32) {
    %c0_i32 = arith.constant 0 : i32
    %c0_i32_0 = arith.constant 0 : i32
    return %arg0, %c0_i32 : i32, i32
  }
}

</mosaic_0001>

<bundles_post_ra>
// kernel: tpu_custom_call.1
= control target key start
LH: loop header
LB: loop body
LE: loop exit
PB: predicated region body
PF: predicated region fallthrough
CT: control target
= control target key end

     0   :  { %6 = vsyncpa [#allocation3], 0  ;;  %s134_s0 = inlined_call_operand.hbm [shape: f32[8,256], index: 0, kind: input, shape index: {}]   ;;  %s135_s1 = inlined_call_operand.hbm [shape: f32[8,256], index: 1, kind: output, shape index: {}]  }
   0x1   :  { %7 = vsyncpa [#allocation4], 0  ;;  %s98_s6 = smov [#allocation2]   ;;  %s50_s10 = scalar_lea.hbm %s134_s0, 256 }
   0x2   :  { %s14_s7 = sshll.u32 %s98_s6, 4  ;;  %p51_p0 = scmp.ne.s32.totalorder %s134_s0, %s50_s10  ;;  %s15_s7 = int_to_ptr.vmem [resolvable:$true] %s14_s7 }
   0x3   :  { %p54_p1 = scmp.lt.u32.totalorder %s50_s10, %s134_s0 }
   0x5   :  { %p56_p2 = pnand %p54_p1, %p51_p0 }
   0x7   :  { %59 = shalt.err (!%p56_p2)
}
   0x8   :  { %s60_s15 = scalar_lea.vmem %s15_s7, 256  ;;  %p65_p4 = scmp.lt.s32.totalorder %s15_s7, %s15_s7 }
   0x9   :  { %p61_p3 = scmp.ne.s32.totalorder %s15_s7, %s60_s15  ;;  %p66_p5 = scmp.lt.s32.totalorder %s60_s15, %s60_s15 }
   0xb   :  { %p67_p6 = por %p66_p5, %p65_p4 }
   0xd   :  { %p68_p7 = pnand %p67_p6, %p61_p3 }
   0xf   :  { %71 = shalt.err (!%p68_p7)
}
  0x10   :  { %17 = dma.hbm_to_vmem [thread:$0]  %s134_s0, 256, %s15_s7, [#allocation3]  }
  0x11   :  { %94 = dma.done.wait [#allocation3], 256  }
  0x12   :  { %95 = vsyncadd [#allocation3], 4294967040  ;;  %v21_v0 = vld [vmem:[#allocation2] sm:$0xff]  ;;  %v22_v1 = vld [vmem:[#allocation2 + $0x8] sm:$0xff]  ;;  %s99_s18 = smov [#allocation5]  }
  0x13   :  { %v23_v2 = vmax.f32 %v21_v0, 0.0  ;;  %v24_v3 = vmax.f32 %v22_v1, 0.0  ;;  %s39_s19 = sshll.u32 %s99_s18, 4  ;;  %s40_s19 = int_to_ptr.vmem [resolvable:$true] %s39_s19 }
  0x14   :  { %s72_s20 = scalar_lea.vmem %s40_s19, 256  ;;  %p77_p9 = scmp.lt.s32.totalorder %s40_s19, %s40_s19 }
  0x15   :  { %v25_v4 = vmul.f32 0.5, %v23_v2  ;;  %v26_v5 = vmul.f32 0.5, %v24_v3  ;;  %p73_p8 = scmp.ne.s32.totalorder %s40_s19, %s72_s20  ;;  %p78_p10 = scmp.lt.s32.totalorder %s72_s20, %s72_s20 }
  0x17   :  { %v27_v6 = vadd.f32 1.0, %v25_v4  ;;  %v28_v7 = vadd.f32 1.0, %v26_v5  ;;  %p79_p11 = por %p78_p10, %p77_p9 }
  0x19   :  { %v29_v8 = vmul.f32 %v27_v6, %v23_v2  ;;  %v30_v9 = vmul.f32 %v28_v7, %v24_v3  ;;  %p80_p12 = pnand %p79_p11, %p73_p8 }
  0x1b   :  { %31 = vst [vmem:[#allocation5] sm:$0xff] %v29_v8  ;;  %32 = vst [vmem:[#allocation5 + $0x8] sm:$0xff] %v30_v9 }
  0x1c   :  { %83 = shalt.err (!%p80_p12)
}
  0x1d   :  { %s84_s22 = scalar_lea.hbm %s135_s1, 256 }
  0x1e   :  { %p85_p13 = scmp.ne.s32.totalorder %s135_s1, %s84_s22  ;;  %p88_p0 = scmp.lt.u32.totalorder %s84_s22, %s135_s1 }
  0x20   :  { %p90_p1 = pnand %p88_p0, %p85_p13 }
  0x22   :  { %93 = shalt.err (!%p90_p1)
}
  0x23   :  { %42 = dma.vmem_to_hbm [thread:$0]  %s40_s19, 256, %s135_s1, [#allocation4]  }
  0x24   :  { %96 = dma.done.wait [#allocation4], 256  }
  0x25   :  { %97 = vsyncadd [#allocation4], 4294967040 }
  0x26   :  { %46 = vsyncpa [#allocation3], 1 }
  0x27   :  { %47 = vsyncpa [#allocation4], 1 }

</bundles_post_ra>
